<compile_context>
chip_gen: v6e
topology: v6e:2x2x1
jax: 0.10.0
libtpu: 0.0.40
codegen_flags: <defaults>
</compile_context>

<pallas_src>
import math

import jax
import jax.numpy as jnp
from jax.experimental import pallas as pl
from jax.experimental.pallas import tpu as pltpu


def _round_up(a, b):
    return ((a + b - 1) // b) * b


def _round_down(a, b):
    return (a // b) * b


def _temporal_decay_kernel(x_ref, w_ref, b_ref, o_ref):
    # x_ref: (tm, P*d_in) stream dtype    w_ref: (P*d_in, P*d_out_pad) stream dtype
    # b_ref: (1, P*d_out_pad) f32         o_ref: (tm, P*d_out_pad) out dtype
    # W/b already carry the negative sign, so exp(-relu(x @ W^T + b)) == exp(min(y, 0)).
    y = jnp.dot(x_ref[...], w_ref[...], preferred_element_type=jnp.float32)
    y = y + b_ref[...]                                # f32 epilogue (v5e-safe)
    # Keep the min before exp: it also bounds garbage rows of a partial last block.
    o_ref[...] = jnp.exp(jnp.minimum(y, 0.0)).astype(o_ref.dtype)


def temporal_decay_forward(d, weight, bias, *, tm=None, stream_dtype=None,
                           min_rows_for_pallas=512, x_buffers=None):
    """gamma = exp(-relu(Conv1d_k1(d)))  with d: (B, L, d_in).

    weight: (d_out, d_in), bias: (d_out,).
    tm:            packed rows per grid step (rounded to a sublane multiple; sweep).
    stream_dtype:  HBM streaming dtype for x / W (default: d.dtype).
    x_buffers:     optional pipeline depth for the x input (pl.Buffered), sweep 2-3
                   when M is small/medium and tm cannot be raised.
    """
    B, L, d_in = d.shape
    d_out = weight.shape[0]
    M = B * L

    out_dtype = d.dtype if jnp.issubdtype(d.dtype, jnp.floating) else jnp.float32

    # Tiny problems: pallas_call + wrapper overhead dominates -> let XLA fuse it.
    if M < min_rows_for_pallas:
        y = (jnp.einsum("bld,od->blo", d.astype(jnp.float32),
                        weight.astype(jnp.float32)) + bias.astype(jnp.float32))
        return jnp.exp(-jnp.maximum(y, 0.0)).astype(out_dtype)

    # Stream x in its native dtype by default (no hidden full-HBM .astype copy).
    if stream_dtype is None:
        stream_dtype = d.dtype if jnp.issubdtype(d.dtype, jnp.floating) else jnp.float32
    stream_dtype = jnp.dtype(stream_dtype)

    # ---- Lane-dense output: pad d_out and pack P logical rows per physical row ----
    if d_out < 128:
        d_out_pad = 1
        while d_out_pad < d_out:
            d_out_pad *= 2                       # power of two -> divides 128
        if d_in <= 128:
            P = 128 // d_out_pad                 # fill all 128 output lanes
        else:
            d_out_pad, P = 128, 1                # lane-dense output without packing
    else:
        d_out_pad = _round_up(d_out, 128)
        P = 1
    # NOTE: extreme d_out << d_in cases trade wasted MXU flops for lane density;
    # the kernel stays memory-bound for typical channel counts.

    x = d.reshape(M, d_in)
    if x.dtype != stream_dtype:
        x = x.astype(stream_dtype)

    # Fold the negation into W/b (saves a full-tile VPU negate per element in-kernel).
    wt = -jnp.transpose(weight).astype(jnp.float32)            # (d_in, d_out)
    bb = -bias.astype(jnp.float32)                              # (d_out,)
    if d_out_pad != d_out:
        wt = jnp.pad(wt, ((0, 0), (0, d_out_pad - d_out)))
        bb = jnp.pad(bb, ((0, d_out_pad - d_out),))

    if P > 1:
        eye = jnp.eye(P, dtype=jnp.float32)
        # block-diagonal: w_packed[p*d_in + i, q*d_out_pad + o] = (p==q) * wt[i, o]
        w_packed = jnp.einsum("pq,io->piqo", eye, wt).reshape(P * d_in, P * d_out_pad)
        b_packed = jnp.tile(bb, P).reshape(1, P * d_out_pad)
    else:
        w_packed = wt
        b_packed = bb.reshape(1, d_out_pad)
    w_packed = w_packed.astype(stream_dtype)      # match x so the MXU runs natively
    # b_packed stays f32: added post-accumulate in the f32 epilogue (v5e-safe).

    din_p = P * d_in
    dout_p = P * d_out_pad

    # Pack rows; pad at most P-1 rows (skipped entirely when M % P == 0).
    if M % P:
        x = jnp.pad(x, ((0, P - M % P), (0, 0)))
    Mp = x.shape[0] // P
    xp = x.reshape(Mp, din_p)

    # ---- Tile selection ----
    x_item = jnp.dtype(stream_dtype).itemsize
    out_item = jnp.dtype(out_dtype).itemsize
    min_item = min(x_item, out_item)
    sub = 8 if min_item >= 4 else (16 if min_item == 2 else 32)   # sublane multiple

    if tm is None:
        tm = 8192 if x_item <= 2 else 4096        # bigger tiles for half-width streams
    tm = max(sub, _round_down(tm, sub))           # enforce (8,128)-compatible blocks

    tm_eff = min(tm, _round_up(Mp, sub))
    if Mp >= 4 * sub:
        # v7x megacore: keep at least 2 "parallel" blocks so both TensorCores get work.
        tm_eff = min(tm_eff, _round_up(pl.cdiv(Mp, 2), sub))
    n_blocks = pl.cdiv(Mp, tm_eff)
    if n_blocks == 1:
        tm_eff = Mp                               # single full-array block, no tail
    elif n_blocks % 2 == 1:
        # Prefer an even block count so the two v7x cores stay balanced.
        tm_eff = _round_up(pl.cdiv(Mp, n_blocks + 1), sub)
        n_blocks = pl.cdiv(Mp, tm_eff)
    # VMEM guardrail: double-buffered x+out tiles at the defaults are ~8 MiB; raise
    # vmem_limit_bytes before pushing tm past ~16k f32 / ~32k bf16 rows (v7x: 64 MiB
    # physical / 32 MiB scoped).

    cost = pl.CostEstimate(
        flops=2 * M * d_in * d_out,
        transcendentals=M * d_out_pad,
        bytes_accessed=(M * d_in * x_item + M * d_out_pad * out_item
                        + din_p * dout_p * x_item + 4 * dout_p),
    )

    x_spec_kwargs = {}
    if x_buffers is not None:
        # Deeper buffering hides DMA-issue latency when per-tile DMA time ~ step cost.
        x_spec_kwargs["pipeline_mode"] = pl.Buffered(x_buffers)

    out = pl.pallas_call(
        _temporal_decay_kernel,
        out_shape=jax.ShapeDtypeStruct((Mp, dout_p), out_dtype),
        grid_spec=pltpu.PrefetchScalarGridSpec(
            num_scalar_prefetch=0,
            grid=(n_blocks,),
            in_specs=[
                pl.BlockSpec((tm_eff, din_p), lambda i: (i, 0), **x_spec_kwargs),
                pl.BlockSpec((din_p, dout_p), lambda i: (0, 0)),    # VMEM-resident
                pl.BlockSpec((1, dout_p), lambda i: (0, 0)),        # VMEM-resident
            ],
            out_specs=pl.BlockSpec((tm_eff, dout_p), lambda i: (i, 0)),
        ),
        compiler_params=pltpu.CompilerParams(
            dimension_semantics=("parallel",)),
        cost_estimate=cost,
    )(xp, w_packed, b_packed)

    gamma = out.reshape(Mp * P, d_out_pad)
    if Mp * P != M:
        gamma = gamma[:M]
    if d_out_pad != d_out:
        gamma = gamma[:, :d_out]
    return gamma.reshape(B, L, d_out)


def _reference(d, weight, bias):
    return jnp.exp(-jnp.maximum(
        jnp.einsum("bld,od->blo", d, weight) + bias, 0.0))


if __name__ == "__main__":
    key = jax.random.PRNGKey(0)
    k_d, k_w, k_b, k_d2 = jax.random.split(key, 4)

    # Shapes implied by the module: (batch, seq, channels).
    B, L, d_in, d_out = 2, 8, 32, 32

    # nn.Conv1d default init: uniform(+-1/sqrt(fan_in)), fan_in = d_in * kernel_size.
    stdv = 1.0 / math.sqrt(d_in * 1)
    weight = jax.random.uniform(k_w, (d_out, d_in), jnp.float32, -stdv, stdv)
    bias = jax.random.uniform(k_b, (d_out,), jnp.float32, -stdv, stdv)

    # 1) Small shape: default path falls back to XLA fusion (kernel overhead regime).
    d_small = jax.random.normal(k_d, (B, L, d_in), jnp.float32)
    gamma_fb = jax.block_until_ready(temporal_decay_forward(d_small, weight, bias))
    assert gamma_fb.shape == (B, L, d_out)
    assert jnp.allclose(gamma_fb, _reference(d_small, weight, bias), atol=1e-5, rtol=1e-5)

    # 2) Same small shape forced through the Pallas kernel (single full-array block).
    gamma = jax.block_until_ready(
        temporal_decay_forward(d_small, weight, bias, min_rows_for_pallas=0))
    assert gamma.shape == (B, L, d_out)
    assert jnp.allclose(gamma, _reference(d_small, weight, bias), atol=1e-5, rtol=1e-5)

    # 3) Larger shape: multi-block parallel grid + partial (masked) last block, f32.
    B2, L2 = 4, 300
    d_big = jax.random.normal(k_d2, (B2, L2, d_in), jnp.float32)
    gamma2 = jax.block_until_ready(temporal_decay_forward(d_big, weight, bias))
    assert gamma2.shape == (B2, L2, d_out)
    assert jnp.allclose(gamma2, _reference(d_big, weight, bias), atol=1e-5, rtol=1e-5)

    # 4) bf16 input: native half-width HBM streaming, bf16 output, f32 MXU accumulate.
    d_bf = d_big.astype(jnp.bfloat16)
    gamma3 = jax.block_until_ready(temporal_decay_forward(d_bf, weight, bias))
    assert gamma3.shape == (B2, L2, d_out)
    assert gamma3.dtype == jnp.bfloat16
    ref3 = _reference(d_bf.astype(jnp.float32), weight, bias)
    assert jnp.allclose(gamma3.astype(jnp.float32), ref3, atol=2e-2, rtol=2e-2)

    print("KERNEL_OK")
</pallas_src>

<mosaic_0001>
module attributes {stable_mosaic.version = 11 : i64} {
  func.func @_temporal_decay_kernel(%arg0: i32, %arg1: memref<4x128xf32, #tpu.memory_space<vmem>>, %arg2: memref<128x128xf32, #tpu.memory_space<vmem>>, %arg3: memref<1x128xf32, #tpu.memory_space<vmem>>, %arg4: memref<4x128xf32, #tpu.memory_space<vmem>>) attributes {dimension_semantics = [#tpu.dimension_semantics<parallel>], iteration_bounds = array<i64: 1>, scalar_prefetch = 0 : i64, scratch_operands = 0 : i64, tpu.core_type = #tpu.core_type<tc>, window_params = [{transform_indices = @transform_0, window_bounds = array<i64: 4, 128>}, {pipeline_mode = #tpu.pipeline_mode<synchronous>, transform_indices = @transform_1, window_bounds = array<i64: 128, 128>}, {pipeline_mode = #tpu.pipeline_mode<synchronous>, transform_indices = @transform_2, window_bounds = array<i64: 1, 128>}, {transform_indices = @transform_3, window_bounds = array<i64: 4, 128>}]} {
    %c0 = arith.constant 0 : index
    %c0_0 = arith.constant 0 : index
    %0 = vector.load %arg1[%c0, %c0_0] : memref<4x128xf32, #tpu.memory_space<vmem>>, vector<4x128xf32>
    %c0_1 = arith.constant 0 : index
    %c0_2 = arith.constant 0 : index
    %1 = vector.load %arg2[%c0_1, %c0_2] : memref<128x128xf32, #tpu.memory_space<vmem>>, vector<128x128xf32>
    %cst = arith.constant dense<0.000000e+00> : vector<4x128xf32>
    %2 = tpu.matmul %0, %1, %cst {dimension_numbers = #tpu.dot_dimension_numbers<[1], [0], [0], [1], [0, 0, 1, 1], [], []>} : vector<4x128xf32>, vector<128x128xf32>, vector<4x128xf32> -> vector<4x128xf32>
    %c0_3 = arith.constant 0 : index
    %c0_4 = arith.constant 0 : index
    %3 = vector.load %arg3[%c0_3, %c0_4] : memref<1x128xf32, #tpu.memory_space<vmem>>, vector<1x128xf32>
    %4 = vector.broadcast %3 : vector<1x128xf32> to vector<4x128xf32>
    %5 = arith.addf %2, %4 : vector<4x128xf32>
    %cst_5 = arith.constant 0.000000e+00 : f32
    %6 = vector.broadcast %cst_5 : f32 to vector<4x128xf32>
    %7 = arith.minimumf %5, %6 : vector<4x128xf32>
    %8 = math.exp %7 : vector<4x128xf32>
    %c0_6 = arith.constant 0 : index
    %c0_7 = arith.constant 0 : index
    %9 = vector.load %arg4[%c0_6, %c0_7] : memref<4x128xf32, #tpu.memory_space<vmem>>, vector<4x128xf32>
    tpu.vector_store %arg4[%c0_6, %c0_7], %8 {strides = array<i32>} : memref<4x128xf32, #tpu.memory_space<vmem>>, vector<4x128xf32>,
    return
  }
  func.func @transform_0(%arg0: i32) -> (i32, i32) {
    %c0_i32 = arith.constant 0 : i32
    %c0_i32_0 = arith.constant 0 : i32
    return %arg0, %c0_i32 : i32, i32
  }
  func.func @transform_1(%arg0: i32) -> (i32, i32) {
    %c0_i32 = arith.constant 0 : i32
    %c0_i32_0 = arith.constant 0 : i32
    %c0_i32_1 = arith.constant 0 : i32
    return %c0_i32, %c0_i32_0 : i32, i32
  }
  func.func @transform_2(%arg0: i32) -> (i32, i32) {
    %c0_i32 = arith.constant 0 : i32
    %c0_i32_0 = arith.constant 0 : i32
    %c0_i32_1 = arith.constant 0 : i32
    return %c0_i32, %c0_i32_0 : i32, i32
  }
  func.func @transform_3(%arg0: i32) -> (i32, i32) {
    %c0_i32 = arith.constant 0 : i32
    %c0_i32_0 = arith.constant 0 : i32
    return %arg0, %c0_i32 : i32, i32
  }
}

</mosaic_0001>

<bundles_post_ra>
// kernel: tpu_custom_call.1
= control target key start
LH: loop header
LB: loop body
LE: loop exit
PB: predicated region body
PF: predicated region fallthrough
CT: control target
= control target key end

     0   :  { %8 = vsyncpa [#allocation3], 0  ;;  %s322_s0 = inlined_call_operand.hbm [shape: f32[4,128], index: 0, kind: input, shape index: {}]   ;;  %s323_s1 = inlined_call_operand.hbm [shape: f32[128,128], index: 1, kind: input, shape index: {}]   ;;  %s324_s2 = inlined_call_operand.vmem [shape: f32[1,128], index: 2, kind: input, shape index: {}]   ;;  %s325_s3 = inlined_call_operand.hbm [shape: f32[4,128], index: 3, kind: output, shape index: {}]  }
   0x1   :  { %9 = vsyncpa [#allocation6], 0 }
   0x2   :  { %10 = vsyncpa [#allocation4], 0  ;;  %s283_s12 = smov [#allocation2]   ;;  %s284_s14 = smov [#allocation5]  }
   0x3   :  { %s17_s13 = sshll.u32 %s283_s12, 4  ;;  %s26_s15 = sshll.u32 %s284_s14, 4  ;;  %s18_s13 = int_to_ptr.vmem [resolvable:$true] %s17_s13  ;;  %s27_s15 = int_to_ptr.vmem [resolvable:$true] %s26_s15 }
   0x4   :  { %s225_s16 = scalar_lea.vmem %s18_s13, 64  ;;  %p230_p1 = scmp.lt.s32.totalorder %s18_s13, %s18_s13 }
   0x5   :  { %p226_p0 = scmp.ne.s32.totalorder %s18_s13, %s225_s16  ;;  %p231_p2 = scmp.lt.s32.totalorder %s225_s16, %s225_s16 }
   0x7   :  { %p232_p3 = por %p231_p2, %p230_p1 }
   0x9   :  { %p233_p4 = pnand %p232_p3, %p226_p0 }
   0xb   :  { %236 = shalt.err (!%p233_p4)
}
   0xc   :  { %20 = dma.hbm_to_vmem [thread:$0]  %s322_s0, 64, %s18_s13, [#allocation3]  }
   0xd   :  { %s245_s19 = scalar_lea.vmem %s27_s15, 2048  ;;  %p250_p6 = scmp.lt.s32.totalorder %s27_s15, %s27_s15 }
   0xe   :  { %p246_p5 = scmp.ne.s32.totalorder %s27_s15, %s245_s19  ;;  %p251_p7 = scmp.lt.s32.totalorder %s245_s19, %s245_s19 }
  0x10   :  { %p252_p8 = por %p251_p7, %p250_p6 }
  0x12   :  { %p253_p9 = pnand %p252_p8, %p246_p5 }
  0x14   :  { %256 = shalt.err (!%p253_p9)
}
  0x15   :  { %s285_s20 = smov 128   ;;  %s286_s21 = smov 8  }
  0x16   :  { %32 = dma.hbm_to_vmem [thread:$0]  %s323_s1, 2048, %s27_s15, [#allocation6], %s285_s20, %s285_s20, %s286_s21  }
  0x17   :  { %277 = dma.done.wait [#allocation3], 64  }
  0x18   :  { %278 = vsyncadd [#allocation3], 4294967232 }
  0x19   :  { %279 = dma.done.wait [#allocation6], 2048  }
  0x1a   :  { %280 = vsyncadd [#allocation6], 4294965248  ;;  %v287_v0 = vmov 0.0   ;;  %vm288_vm0 = vmmov 0   ;;  %v57_v1 = vld [vmem:[#allocation5 + $0x78] sm:$0xff]  ;;  %v56_v2 = vld [vmem:[#allocation5 + $0x70] sm:$0xff] }
  0x1b   :  { %173 = vmatprep.subr.mxu0 %v287_v0  ;;  %205 = vmatprep.mubr.msk.f32.mxu0 %vm288_vm0, %v287_v0  ;;  %v55_v3 = vld [vmem:[#allocation5 + $0x68] sm:$0xff]  ;;  %v54_v4 = vld [vmem:[#allocation5 + $0x60] sm:$0xff]  ;;  %v53_v5 = vld [vmem:[#allocation5 + $0x58] sm:$0xff]  ;;  %s289_s24 = smov [#allocation7]  }
  0x1c   :  { %174 = vmatpush3.msra.mxu0 %v57_v1  ;;  %v52_v6 = vld [vmem:[#allocation5 + $0x50] sm:$0xff]  ;;  %v51_v7 = vld [vmem:[#allocation5 + $0x48] sm:$0xff]  ;;  %v50_v8 = vld [vmem:[#allocation5 + $0x40] sm:$0xff]  ;;  %s145_s25 = sshll.u32 %s289_s24, 4  ;;  %s146_s25 = int_to_ptr.vmem [resolvable:$true] %s145_s25 }
  0x1d   :  { %175 = vmatprep.subr.mxu0 %v287_v0  ;;  %v49_v9 = vld [vmem:[#allocation5 + $0x38] sm:$0xff]  ;;  %v48_v10 = vld [vmem:[#allocation5 + $0x30] sm:$0xff]  ;;  %v47_v11 = vld [vmem:[#allocation5 + $0x28] sm:$0xff]  ;;  %s257_s26 = scalar_lea.vmem %s146_s25, 64  ;;  %p262_p11 = scmp.lt.s32.totalorder %s146_s25, %s146_s25 }
  0x1e   :  { %176 = vmatpush3.msra.mxu0 %v56_v2  ;;  %v46_v12 = vld [vmem:[#allocation5 + $0x20] sm:$0xff]  ;;  %v45_v13 = vld [vmem:[#allocation5 + $0x18] sm:$0xff]  ;;  %v44_v14 = vld [vmem:[#allocation5 + $0x10] sm:$0xff]  ;;  %p258_p10 = scmp.ne.s32.totalorder %s146_s25, %s257_s26  ;;  %p263_p12 = scmp.lt.s32.totalorder %s257_s26, %s257_s26 }
  0x1f   :  { %177 = vmatprep.subr.mxu0 %v287_v0  ;;  %v43_v15 = vld [vmem:[#allocation5 + $0x8] sm:$0xff]  ;;  %v42_v16 = vld [vmem:[#allocation5] sm:$0xff]  ;;  %v41_v17 = vld [vmem:[#allocation2] sm:$0xf] }
  0x20   :  { %178 = vmatpush3.msra.mxu0 %v55_v3  ;;  %v155_v18 = vld [vmem:[%s324_s2] ss:$0 sm:$0xff]  ;;  %p264_p13 = por %p263_p12, %p262_p11 }
  0x21   :  { %179 = vmatprep.subr.mxu0 %v287_v0 }
  0x22   :  { %180 = vmatpush3.msra.mxu0 %v54_v4  ;;  %p265_p0 = pnand %p264_p13, %p258_p10 }
  0x23   :  { %181 = vmatprep.subr.mxu0 %v287_v0 }
  0x24   :  { %182 = vmatpush3.msra.mxu0 %v53_v5 }
  0x25   :  { %183 = vmatprep.subr.mxu0 %v287_v0 }
  0x26   :  { %184 = vmatpush3.msra.mxu0 %v52_v6 }
  0x27   :  { %185 = vmatprep.subr.mxu0 %v287_v0 }
  0x28   :  { %186 = vmatpush3.msra.mxu0 %v51_v7 }
  0x29   :  { %187 = vmatprep.subr.mxu0 %v287_v0 }
  0x2a   :  { %188 = vmatpush3.msra.mxu0 %v50_v8 }
  0x2b   :  { %189 = vmatprep.subr.mxu0 %v287_v0 }
  0x2c   :  { %190 = vmatpush3.msra.mxu0 %v49_v9 }
  0x2d   :  { %191 = vmatprep.subr.mxu0 %v287_v0 }
  0x2e   :  { %192 = vmatpush3.msra.mxu0 %v48_v10 }
  0x2f   :  { %193 = vmatprep.subr.mxu0 %v287_v0 }
  0x30   :  { %194 = vmatpush3.msra.mxu0 %v47_v11 }
  0x31   :  { %195 = vmatprep.subr.mxu0 %v287_v0 }
  0x32   :  { %196 = vmatpush3.msra.mxu0 %v46_v12 }
  0x33   :  { %197 = vmatprep.subr.mxu0 %v287_v0 }
  0x34   :  { %198 = vmatpush3.msra.mxu0 %v45_v13 }
  0x35   :  { %199 = vmatprep.subr.mxu0 %v287_v0 }
  0x36   :  { %200 = vmatpush3.msra.mxu0 %v44_v14 }
  0x37   :  { %201 = vmatprep.subr.mxu0 %v287_v0 }
  0x38   :  { %202 = vmatpush3.msra.mxu0 %v43_v15 }
  0x39   :  { %203 = vmatprep.subr.mxu0 %v287_v0 }
  0x3a   :  { %204 = vmatpush3.msra.mxu0 %v42_v16 }
  0x3b   :  { %206 = vmatmul.mubr.f32.vlgmr.msra.gmra.mxu0 %v41_v17 }
  0xfb   :  { %v131_v19 = vpop.f32.mrf.mxu0 }
  0xfc   :  { %v132_v20 = vadd.f32 %v155_v18, %v131_v19 }
  0xfd   :  { %v207_v21 = vpop.f32.mrf.mxu0 }
  0xfe   :  { %v135_v22 = vmin.f32 %v132_v20, 0.0 }
 0x100   :  { %v136_v23 = vmul.f32 1.442695, %v135_v22 }
 0x102   :  { %215 = vpow2.f32 %v136_v23 }
 0x10f   :  { %v216_v24 = vpop.eup %215 }
 0x110   :  { %138 = vst [vmem:[#allocation7] sm:$0xf] %v216_v24 }
 0x111   :  { %268 = shalt.err (!%p265_p0)
}
 0x112   :  { %148 = dma.vmem_to_hbm [thread:$0]  %s146_s25, 64, %s325_s3, [#allocation4]  }
 0x113   :  { %281 = dma.done.wait [#allocation4], 64  }
 0x114   :  { %282 = vsyncadd [#allocation4], 4294967232 }
 0x115   :  { %152 = vsyncpa [#allocation3], 1 }
 0x116   :  { %153 = vsyncpa [#allocation6], 1 }
 0x117   :  { %154 = vsyncpa [#allocation4], 1 }

</bundles_post_ra>
